<compile_context>
chip_gen: v6e
topology: v6e:2x2x1
jax: 0.10.0
libtpu: 0.0.40
codegen_flags: <defaults>
</compile_context>

<pallas_src>
import math
from functools import partial

import jax
import jax.numpy as jnp
from jax.experimental import pallas as pl
from jax.experimental.pallas import tpu as pltpu

_INV_SQRT2 = 1.0 / math.sqrt(2.0)

# Config value that would come from cfg.MODEL.ENTROPY_MODEL.BIN
BIN = 1.0
MEAN = 0.0   # forward(..., mean=0) default

# Candidate slab widths (lanes), widest first.
_WIDTHS = (4096, 2048, 1024, 512, 256, 128)
# Cap each block at 2 MiB of f32: 4 arrays x 2 buffers x 2 MiB = 16 MiB VMEM,
# which fits once vmem_limit_bytes is raised (see CompilerParams below).
_BLOCK_ELEMS_CAP = 1 << 19   # 524288 f32 elements = 2 MiB

# Abramowitz & Stegun 7.1.26 coefficients (erfc(x) ~ poly(t)*exp(-x^2),
# t = 1/(1 + p*x), x >= 0, |abs error| <= 1.5e-7).
_AS_P = 0.3275911
_AS_A1 = 0.254829592
_AS_A2 = -0.284496736
_AS_A3 = 1.421413741
_AS_A4 = -1.453152027
_AS_A5 = 1.061405429


def _erfc_nonneg(x):
    """erfc(x) for x >= 0 via A&S 7.1.26.  exp() runs on the EUP slot."""
    t = 1.0 / (1.0 + _AS_P * x)     # exact divide: keeps abs err <= 1.5e-7
    poly = t * (_AS_A1 + t * (_AS_A2 + t * (_AS_A3 + t * (_AS_A4 + t * _AS_A5))))
    return poly * jnp.exp(-(x * x))


def _erfc(x):
    """erfc(x) for any sign, using erfc(-x) = 2 - erfc(x)."""
    y = _erfc_nonneg(jnp.abs(x))
    return jnp.where(x < 0.0, 2.0 - y, y)


def _entropy_kernel(x_ref, scale_ref, qx_ref, lik_ref, *, half, mean):
    x = x_ref[...]
    scale = scale_ref[...]

    # _quantize(x, 'quantize') -> round(x) (round-half-to-even, like torch.round)
    qx = jnp.round(x)
    qx_ref[...] = qx

    # c = |qx - mean|; skip the subtract entirely for the module's default mean=0.
    c = jnp.abs(qx) if mean == 0.0 else jnp.abs(qx - mean)

    # inv = 1 / (scale * sqrt(2)): EUP approximate reciprocal + one
    # Newton-Raphson step (rel err ~1e-6, well under the 1e-5 budget),
    # with the 1/sqrt(2) folded into the same product.
    r0 = pl.reciprocal(scale, approx=True)
    r = r0 * (2.0 - scale * r0)
    inv = r * _INV_SQRT2

    a = c * inv
    hb = half * inv
    arg_hi = a - hb          # (c - half) * inv  (negative only when c < half)
    arg_lo = a + hb          # (c + half) * inv  (always positive since c >= 0)

    # likelihood = Phi((half-c)/s) - Phi((-half-c)/s)
    #            = 0.5*(erfc(arg_hi) - erfc(arg_lo))
    lik = 0.5 * (_erfc(arg_hi) - _erfc_nonneg(arg_lo))
    lik_ref[...] = lik


def _choose_layout(n_elem):
    """Pick (width, needs_pad) — widest lane count dividing n_elem exactly."""
    # Prefer widths that also leave >= 8 rows (a full sublane tile).
    for w in _WIDTHS:
        if n_elem % w == 0 and n_elem // w >= 8:
            return w, False
    for w in _WIDTHS:
        if n_elem % w == 0:
            return w, False
    return 128, True


def symmetric_conditional_forward(x, scale, *, bin_size=BIN, mean=MEAN):
    """Eval-mode forward of SymmetricConditionalModel.

    x, scale : float32 arrays of identical shape (N, C, H, W).
    Returns (quantized_x, likelihood), both shaped like x.
    """
    assert x.shape == scale.shape
    orig_shape = x.shape
    n_elem = x.size

    width, needs_pad = _choose_layout(n_elem)

    if needs_pad:
        # Rare fallback (element count not a multiple of 128): zero-pad the
        # flat buffer.  Costs ~2x HBM traffic but only triggers for exotic
        # shapes.  Scale padded with 1.0 so the (discarded) tail stays finite.
        # TODO(synk): handle the ragged tail fully in-kernel (masked final
        # block / manual DMA) to avoid the extra pad + slice copies.
        padded = pl.cdiv(n_elem, width) * width
        xf = jnp.pad(x.reshape(-1), (0, padded - n_elem))
        sf = jnp.pad(scale.reshape(-1), (0, padded - n_elem), constant_values=1.0)
    else:
        padded = n_elem
        xf = x.reshape(-1)        # contiguous reshape: no copy
        sf = scale.reshape(-1)

    rows = padded // width
    # rows_cap is a power of two >= 8, so always a legal multiple of 8.
    rows_cap = max(8, _BLOCK_ELEMS_CAP // width)
    if rows >= 16:
        # Guarantee >= 2 grid steps: lets ("parallel",) shard across both v7x
        # TensorCores and gives the input/output pipeline something to overlap.
        # A partial final block is fine: OOB input rows may compute garbage
        # (even NaN), but the corresponding output rows are masked off.
        half_rows = max(8, (rows // 2) // 8 * 8)
        block_rows = min(rows_cap, half_rows)
    else:
        block_rows = rows            # single full-extent block
    grid = (pl.cdiv(rows, block_rows),)

    x2 = xf.reshape(rows, width)
    s2 = sf.reshape(rows, width)

    kernel = partial(_entropy_kernel, half=bin_size / 2.0, mean=float(mean))
    blk = pl.BlockSpec((block_rows, width), lambda i: (i, 0))
    # NOTE: pipeline_mode=pl.Buffered(3) on the input specs is an optional
    # +1-3% if a profile shows exposed DMA at block boundaries (+4 MiB VMEM).

    qx2, lik2 = pl.pallas_call(
        kernel,
        out_shape=(
            jax.ShapeDtypeStruct((rows, width), x.dtype),
            jax.ShapeDtypeStruct((rows, width), x.dtype),
        ),
        grid_spec=pltpu.PrefetchScalarGridSpec(
            num_scalar_prefetch=0,
            grid=grid,
            in_specs=[blk, blk],
            out_specs=[blk, blk],
        ),
        compiler_params=pltpu.CompilerParams(
            dimension_semantics=("parallel",),
            # 16 MiB of double-buffered block data + compiler scratch; v5e's
            # default scoped-VMEM window is only 16 MiB, so set this explicitly.
            vmem_limit_bytes=32 * 1024 * 1024,
        ),
    )(x2, s2)

    if needs_pad:
        qx = qx2.reshape(-1)[:n_elem].reshape(orig_shape)
        lik = lik2.reshape(-1)[:n_elem].reshape(orig_shape)
    else:
        qx = qx2.reshape(orig_shape)
        lik = lik2.reshape(orig_shape)
    return qx, lik


if __name__ == "__main__":
    key = jax.random.PRNGKey(0)
    kx, ks = jax.random.split(key)

    N, C, H, W = 2, 4, 16, 16          # NCHW, matching the PyTorch convention
    x = jax.random.normal(kx, (N, C, H, W), dtype=jnp.float32) * 3.0
    # scale is assumed strictly positive (the PyTorch pipeline lower-bounds it upstream)
    scale = jax.nn.softplus(jax.random.normal(ks, (N, C, H, W), dtype=jnp.float32)) + 0.1

    qx, lik = symmetric_conditional_forward(x, scale, bin_size=BIN, mean=MEAN)
    jax.block_until_ready((qx, lik))

    # lightweight sanity check against a pure-JAX reference (the literal PyTorch form)
    qx_ref = jnp.round(x)
    c = jnp.abs(qx_ref - MEAN)
    half = BIN / 2.0
    lik_ref = (0.5 * (1.0 + jax.lax.erf((half - c) / scale * _INV_SQRT2))
               - 0.5 * (1.0 + jax.lax.erf((-half - c) / scale * _INV_SQRT2)))
    assert jnp.allclose(qx, qx_ref, atol=1e-6)
    assert jnp.allclose(lik, lik_ref, atol=1e-5)
    assert bool(jnp.all(lik >= 0.0))

    print("KERNEL_OK")

# TODO(synk): training-mode 'noise' quantization (uniform(-bin/2, bin/2) noise via
# pltpu.prng_random_bits), the unimplemented 'symbol' mode, tensor-valued `mean`,
# and the compress/decompress paths of the base class are not part of the eval
# forward and are omitted.
</pallas_src>

<mosaic_0001>
module attributes {stable_mosaic.version = 11 : i64} {
  func.func @_entropy_kernel(%arg0: i32, %arg1: memref<8x256xf32, #tpu.memory_space<vmem>>, %arg2: memref<8x256xf32, #tpu.memory_space<vmem>>, %arg3: memref<8x256xf32, #tpu.memory_space<vmem>>, %arg4: memref<8x256xf32, #tpu.memory_space<vmem>>) attributes {dimension_semantics = [#tpu.dimension_semantics<parallel>], iteration_bounds = array<i64: 1>, scalar_prefetch = 0 : i64, scratch_operands = 0 : i64, tpu.core_type = #tpu.core_type<tc>, window_params = [{transform_indices = @transform_0, window_bounds = array<i64: 8, 256>}, {transform_indices = @transform_1, window_bounds = array<i64: 8, 256>}, {transform_indices = @transform_2, window_bounds = array<i64: 8, 256>}, {transform_indices = @transform_3, window_bounds = array<i64: 8, 256>}]} {
    %c0 = arith.constant 0 : index
    %c0_0 = arith.constant 0 : index
    %0 = vector.load %arg1[%c0, %c0_0] : memref<8x256xf32, #tpu.memory_space<vmem>>, vector<8x256xf32>
    %c0_1 = arith.constant 0 : index
    %c0_2 = arith.constant 0 : index
    %1 = vector.load %arg2[%c0_1, %c0_2] : memref<8x256xf32, #tpu.memory_space<vmem>>, vector<8x256xf32>
    %2 = math.roundeven %0 : vector<8x256xf32>
    %c0_3 = arith.constant 0 : index
    %c0_4 = arith.constant 0 : index
    %3 = vector.load %arg3[%c0_3, %c0_4] : memref<8x256xf32, #tpu.memory_space<vmem>>, vector<8x256xf32>
    tpu.vector_store %arg3[%c0_3, %c0_4], %2 {strides = array<i32>} : memref<8x256xf32, #tpu.memory_space<vmem>>, vector<8x256xf32>,
    %4 = math.absf %2 : vector<8x256xf32>
    %5 = tpu.reciprocal %1 {approx = true} : vector<8x256xf32> -> vector<8x256xf32>
    %6 = arith.mulf %1, %5 : vector<8x256xf32>
    %cst = arith.constant 2.000000e+00 : f32
    %7 = vector.broadcast %cst : f32 to vector<8x256xf32>
    %8 = arith.subf %7, %6 : vector<8x256xf32>
    %9 = arith.mulf %5, %8 : vector<8x256xf32>
    %cst_5 = arith.constant 0.707106769 : f32
    %10 = vector.broadcast %cst_5 : f32 to vector<8x256xf32>
    %11 = arith.mulf %9, %10 : vector<8x256xf32>
    %12 = arith.mulf %4, %11 : vector<8x256xf32>
    %cst_6 = arith.constant 5.000000e-01 : f32
    %13 = vector.broadcast %cst_6 : f32 to vector<8x256xf32>
    %14 = arith.mulf %13, %11 : vector<8x256xf32>
    %15 = arith.subf %12, %14 : vector<8x256xf32>
    %16 = arith.addf %12, %14 : vector<8x256xf32>
    %17 = math.absf %15 : vector<8x256xf32>
    %cst_7 = arith.constant 0.327591091 : f32
    %18 = vector.broadcast %cst_7 : f32 to vector<8x256xf32>
    %19 = arith.mulf %18, %17 : vector<8x256xf32>
    %cst_8 = arith.constant 1.000000e+00 : f32
    %20 = vector.broadcast %cst_8 : f32 to vector<8x256xf32>
    %21 = arith.addf %20, %19 : vector<8x256xf32>
    %cst_9 = arith.constant 1.000000e+00 : f32
    %22 = vector.broadcast %cst_9 : f32 to vector<8x256xf32>
    %23 = arith.divf %22, %21 : vector<8x256xf32>
    %cst_10 = arith.constant 1.06140542 : f32
    %24 = vector.broadcast %cst_10 : f32 to vector<8x256xf32>
    %25 = arith.mulf %23, %24 : vector<8x256xf32>
    %cst_11 = arith.constant -1.45315206 : f32
    %26 = vector.broadcast %cst_11 : f32 to vector<8x256xf32>
    %27 = arith.addf %26, %25 : vector<8x256xf32>
    %28 = arith.mulf %23, %27 : vector<8x256xf32>
    %cst_12 = arith.constant 1.42141378 : f32
    %29 = vector.broadcast %cst_12 : f32 to vector<8x256xf32>
    %30 = arith.addf %29, %28 : vector<8x256xf32>
    %31 = arith.mulf %23, %30 : vector<8x256xf32>
    %cst_13 = arith.constant -0.284496725 : f32
    %32 = vector.broadcast %cst_13 : f32 to vector<8x256xf32>
    %33 = arith.addf %32, %31 : vector<8x256xf32>
    %34 = arith.mulf %23, %33 : vector<8x256xf32>
    %cst_14 = arith.constant 0.254829586 : f32
    %35 = vector.broadcast %cst_14 : f32 to vector<8x256xf32>
    %36 = arith.addf %35, %34 : vector<8x256xf32>
    %37 = arith.mulf %23, %36 : vector<8x256xf32>
    %38 = arith.mulf %17, %17 : vector<8x256xf32>
    %cst_15 = arith.constant 0.000000e+00 : f32
    %39 = vector.broadcast %cst_15 : f32 to vector<8x256xf32>
    %40 = arith.subf %39, %38 : vector<8x256xf32>
    %41 = math.exp %40 : vector<8x256xf32>
    %42 = arith.mulf %37, %41 : vector<8x256xf32>
    %cst_16 = arith.constant 0.000000e+00 : f32
    %43 = vector.broadcast %cst_16 : f32 to vector<8x256xf32>
    %44 = arith.cmpf olt, %15, %43 : vector<8x256xf32>
    %cst_17 = arith.constant 2.000000e+00 : f32
    %45 = vector.broadcast %cst_17 : f32 to vector<8x256xf32>
    %46 = arith.subf %45, %42 : vector<8x256xf32>
    %47 = arith.select %44, %46, %42 : vector<8x256xi1>, vector<8x256xf32>
    %cst_18 = arith.constant 0.327591091 : f32
    %48 = vector.broadcast %cst_18 : f32 to vector<8x256xf32>
    %49 = arith.mulf %48, %16 : vector<8x256xf32>
    %cst_19 = arith.constant 1.000000e+00 : f32
    %50 = vector.broadcast %cst_19 : f32 to vector<8x256xf32>
    %51 = arith.addf %50, %49 : vector<8x256xf32>
    %cst_20 = arith.constant 1.000000e+00 : f32
    %52 = vector.broadcast %cst_20 : f32 to vector<8x256xf32>
    %53 = arith.divf %52, %51 : vector<8x256xf32>
    %cst_21 = arith.constant 1.06140542 : f32
    %54 = vector.broadcast %cst_21 : f32 to vector<8x256xf32>
    %55 = arith.mulf %53, %54 : vector<8x256xf32>
    %cst_22 = arith.constant -1.45315206 : f32
    %56 = vector.broadcast %cst_22 : f32 to vector<8x256xf32>
    %57 = arith.addf %56, %55 : vector<8x256xf32>
    %58 = arith.mulf %53, %57 : vector<8x256xf32>
    %cst_23 = arith.constant 1.42141378 : f32
    %59 = vector.broadcast %cst_23 : f32 to vector<8x256xf32>
    %60 = arith.addf %59, %58 : vector<8x256xf32>
    %61 = arith.mulf %53, %60 : vector<8x256xf32>
    %cst_24 = arith.constant -0.284496725 : f32
    %62 = vector.broadcast %cst_24 : f32 to vector<8x256xf32>
    %63 = arith.addf %62, %61 : vector<8x256xf32>
    %64 = arith.mulf %53, %63 : vector<8x256xf32>
    %cst_25 = arith.constant 0.254829586 : f32
    %65 = vector.broadcast %cst_25 : f32 to vector<8x256xf32>
    %66 = arith.addf %65, %64 : vector<8x256xf32>
    %67 = arith.mulf %53, %66 : vector<8x256xf32>
    %68 = arith.mulf %16, %16 : vector<8x256xf32>
    %cst_26 = arith.constant 0.000000e+00 : f32
    %69 = vector.broadcast %cst_26 : f32 to vector<8x256xf32>
    %70 = arith.subf %69, %68 : vector<8x256xf32>
    %71 = math.exp %70 : vector<8x256xf32>
    %72 = arith.mulf %67, %71 : vector<8x256xf32>
    %73 = arith.subf %47, %72 : vector<8x256xf32>
    %cst_27 = arith.constant 5.000000e-01 : f32
    %74 = vector.broadcast %cst_27 : f32 to vector<8x256xf32>
    %75 = arith.mulf %74, %73 : vector<8x256xf32>
    %c0_28 = arith.constant 0 : index
    %c0_29 = arith.constant 0 : index
    %76 = vector.load %arg4[%c0_28, %c0_29] : memref<8x256xf32, #tpu.memory_space<vmem>>, vector<8x256xf32>
    tpu.vector_store %arg4[%c0_28, %c0_29], %75 {strides = array<i32>} : memref<8x256xf32, #tpu.memory_space<vmem>>, vector<8x256xf32>,
    return
  }
  func.func @transform_0(%arg0: i32) -> (i32, i32) {
    %c0_i32 = arith.constant 0 : i32
    %c0_i32_0 = arith.constant 0 : i32
    return %arg0, %c0_i32 : i32, i32
  }
  func.func @transform_1(%arg0: i32) -> (i32, i32) {
    %c0_i32 = arith.constant 0 : i32
    %c0_i32_0 = arith.constant 0 : i32
    return %arg0, %c0_i32 : i32, i32
  }
  func.func @transform_2(%arg0: i32) -> (i32, i32) {
    %c0_i32 = arith.constant 0 : i32
    %c0_i32_0 = arith.constant 0 : i32
    return %arg0, %c0_i32 : i32, i32
  }
  func.func @transform_3(%arg0: i32) -> (i32, i32) {
    %c0_i32 = arith.constant 0 : i32
    %c0_i32_0 = arith.constant 0 : i32
    return %arg0, %c0_i32 : i32, i32
  }
}

</mosaic_0001>

<bundles_post_ra>
// kernel: tpu_custom_call.1
= control target key start
LH: loop header
LB: loop body
LE: loop exit
PB: predicated region body
PF: predicated region fallthrough
CT: control target
= control target key end

     0   :  { %9 = vsyncpa [#allocation3], 0  ;;  %s355_s0 = inlined_call_operand.hbm [shape: f32[8,256], index: 0, kind: input, shape index: {}]   ;;  %s356_s1 = inlined_call_operand.hbm [shape: f32[8,256], index: 1, kind: input, shape index: {}]   ;;  %s357_s2 = inlined_call_operand.hbm [shape: f32[8,256], index: 2, kind: output, shape index: {0}]   ;;  %s358_s3 = inlined_call_operand.hbm [shape: f32[8,256], index: 3, kind: output, shape index: {1}]  }
   0x1   :  { %10 = vsyncpa [#allocation6], 0 }
   0x2   :  { %11 = vsyncpa [#allocation4], 0 }
   0x3   :  { %12 = vsyncpa [#allocation9], 0  ;;  %s311_s12 = smov [#allocation2]   ;;  %s312_s14 = smov [#allocation5]  }
   0x4   :  { %s19_s13 = sshll.u32 %s311_s12, 4  ;;  %s29_s15 = sshll.u32 %s312_s14, 4  ;;  %s20_s13 = int_to_ptr.vmem [resolvable:$true] %s19_s13  ;;  %s30_s15 = int_to_ptr.vmem [resolvable:$true] %s29_s15 }
   0x5   :  { %s231_s16 = scalar_lea.vmem %s20_s13, 256  ;;  %p236_p1 = scmp.lt.s32.totalorder %s20_s13, %s20_s13 }
   0x6   :  { %p232_p0 = scmp.ne.s32.totalorder %s20_s13, %s231_s16  ;;  %p237_p2 = scmp.lt.s32.totalorder %s231_s16, %s231_s16 }
   0x8   :  { %p238_p3 = por %p237_p2, %p236_p1 }
   0xa   :  { %p239_p4 = pnand %p238_p3, %p232_p0 }
   0xc   :  { %242 = shalt.err (!%p239_p4)
}
   0xd   :  { %22 = dma.hbm_to_vmem [thread:$0]  %s355_s0, 256, %s20_s13, [#allocation3]  }
   0xe   :  { %s251_s19 = scalar_lea.vmem %s30_s15, 256  ;;  %p256_p6 = scmp.lt.s32.totalorder %s30_s15, %s30_s15 }
   0xf   :  { %p252_p5 = scmp.ne.s32.totalorder %s30_s15, %s251_s19  ;;  %p257_p7 = scmp.lt.s32.totalorder %s251_s19, %s251_s19 }
  0x11   :  { %p258_p8 = por %p257_p7, %p256_p6 }
  0x13   :  { %p259_p9 = pnand %p258_p8, %p252_p5 }
  0x15   :  { %262 = shalt.err (!%p259_p9)
}
  0x16   :  { %32 = dma.hbm_to_vmem [thread:$0]  %s356_s1, 256, %s30_s15, [#allocation6]  }
  0x17   :  { %303 = dma.done.wait [#allocation3], 256  }
  0x18   :  { %304 = vsyncadd [#allocation3], 4294967040 }
  0x19   :  { %305 = dma.done.wait [#allocation6], 256  }
  0x1a   :  { %306 = vsyncadd [#allocation6], 4294967040  ;;  %v39_v0 = vld [vmem:[#allocation2] sm:$0xff]  ;;  %v41_v1 = vld [vmem:[#allocation5] sm:$0xff]  ;;  %s313_s0 = smov [#allocation7]  }
  0x1b   :  { %v40_v2 = vld [vmem:[#allocation2 + $0x8] sm:$0xff]  ;;  %v185_v3 = vcvt.f32.s32 %v39_v0  ;;  %203 = vrcp.f32 %v41_v1  ;;  %v42_v4 = vld [vmem:[#allocation5 + $0x8] sm:$0xff]  ;;  %v183_v5 = vand.u32 2147483647, %v39_v0  ;;  %v188_v8 = vand.u32 2147483648, %v39_v0  ;;  %s159_s1 = sshll.u32 %s313_s0, 4  ;;  %s160_s1 = int_to_ptr.vmem [resolvable:$true] %s159_s1 }
  0x1c   :  { %v193_v6 = vcvt.f32.s32 %v40_v2  ;;  %205 = vrcp.f32 %v42_v4  ;;  %v191_v9 = vand.u32 2147483647, %v40_v2  ;;  %v196_v11 = vand.u32 2147483648, %v40_v2  ;;  %s263_s22 = scalar_lea.vmem %s160_s1, 256  ;;  %p268_p11 = scmp.lt.s32.totalorder %s160_s1, %s160_s1 }
  0x1d   :  { %v186_v7 = vcvt.s32.f32 %v185_v3  ;;  %vm184_vm0 = vcmp.lt.f32.partialorder %v183_v5, 8388608.0  ;;  %p264_p10 = scmp.ne.s32.totalorder %s160_s1, %s263_s22  ;;  %p269_p12 = scmp.lt.s32.totalorder %s263_s22, %s263_s22 }
  0x1e   :  { %v194_v10 = vcvt.s32.f32 %v193_v6  ;;  %vm192_vm1 = vcmp.lt.f32.partialorder %v191_v9, 8388608.0 }
  0x1f   :  { %v187_v12 = vand.u32 2147483647, %v186_v7  ;;  %p270_p13 = por %p269_p12, %p268_p11 }
  0x20   :  { %v195_v13 = vand.u32 2147483647, %v194_v10 }
  0x21   :  { %v189_v14 = vor.u32 %v188_v8, %v187_v12  ;;  %p271_p0 = pnand %p270_p13, %p264_p10 }
  0x22   :  { %v197_v15 = vor.u32 %v196_v11, %v195_v13 }
  0x23   :  { %v190_v16 = vsel %vm184_vm0, %v189_v14, %v39_v0 }
  0x24   :  { %45 = vst [vmem:[#allocation7] sm:$0xff] %v190_v16  ;;  %v198_v17 = vsel %vm192_vm1, %v197_v15, %v40_v2 }
  0x25   :  { %46 = vst [vmem:[#allocation7 + $0x8] sm:$0xff] %v198_v17 }
  0x26   :  { %274 = shalt.err (!%p271_p0)
}
  0x27   :  { %162 = dma.vmem_to_hbm [thread:$0]  %s160_s1, 256, %s357_s2, [#allocation4]   ;;  %v47_v24 = vand.u32 2147483647, %v190_v16  ;;  %v48_v26 = vand.u32 2147483647, %v198_v17 }
  0x28   :  { %v204_v18 = vpop.eup %203  ;;  %s314_s2 = smov [#allocation8]  }
  0x29   :  { %v206_v19 = vpop.eup %205  ;;  %v51_v20 = vmul.f32 %v204_v18, %v41_v1  ;;  %s169_s25 = sshll.u32 %s314_s2, 4  ;;  %s170_s25 = int_to_ptr.vmem [resolvable:$true] %s169_s25 }
  0x2a   :  { %v52_v21 = vmul.f32 %v206_v19, %v42_v4  ;;  %s283_s26 = scalar_lea.vmem %s170_s25, 256  ;;  %p288_p2 = scmp.lt.s32.totalorder %s170_s25, %s170_s25 }
  0x2b   :  { %v53_v22 = vsub.f32 2.0, %v51_v20  ;;  %p284_p1 = scmp.ne.s32.totalorder %s170_s25, %s283_s26  ;;  %p289_p3 = scmp.lt.s32.totalorder %s283_s26, %s283_s26 }
  0x2c   :  { %v54_v23 = vsub.f32 2.0, %v52_v21 }
  0x2d   :  { %v55_v25 = vmul.f32 %v204_v18, %v53_v22  ;;  %p290_p4 = por %p289_p3, %p288_p2 }
  0x2e   :  { %v56_v27 = vmul.f32 %v206_v19, %v54_v23 }
  0x2f   :  { %v57_v28 = vmul.f32 0.70710677, %v55_v25  ;;  %p291_p5 = pnand %p290_p4, %p284_p1 }
  0x30   :  { %v58_v29 = vmul.f32 0.70710677, %v56_v27 }
  0x31   :  { %v59_v30 = vmul.f32 %v57_v28, %v47_v24  ;;  %v61_v31 = vmul.f32 0.5, %v57_v28 }
  0x32   :  { %v60_v32 = vmul.f32 %v58_v29, %v48_v26  ;;  %v62_v33 = vmul.f32 0.5, %v58_v29 }
  0x33   :  { %v344_v34 = vsub.f32 %v59_v30, %v61_v31  ;;  %v65_v35 = vadd.f32 %v61_v31, %v59_v30 }
  0x34   :  { %v346_v36 = vsub.f32 %v60_v32, %v62_v33  ;;  %v66_v37 = vadd.f32 %v62_v33, %v60_v32 }
  0x35   :  { %v67_v38 = vand.u32 2147483647, %v344_v34  ;;  %v111_v39 = vmul.f32 0.3275911, %v65_v35  ;;  %v137_v49 = vmul.f32 %v65_v35, %v65_v35  ;;  %vm105_vm2 = vcmp.lt.f32.partialorder %v344_v34, 0.0 }
  0x36   :  { %v68_v40 = vand.u32 2147483647, %v346_v36  ;;  %v112_v41 = vmul.f32 0.3275911, %v66_v37  ;;  %v138_v52 = vmul.f32 %v66_v37, %v66_v37  ;;  %vm106_vm3 = vcmp.lt.f32.partialorder %v346_v36, 0.0 }
  0x37   :  { %v69_v42 = vmul.f32 0.3275911, %v67_v38  ;;  %v113_v43 = vadd.f32 1.0, %v111_v39  ;;  %v95_v48 = vmul.f32 %v67_v38, %v67_v38  ;;  %v139_v53 = vsub.f32 0.0, %v137_v49 }
  0x38   :  { %v70_v44 = vmul.f32 0.3275911, %v68_v40  ;;  %v114_v45 = vadd.f32 1.0, %v112_v41  ;;  %v96_v50 = vmul.f32 %v68_v40, %v68_v40  ;;  %v140_v58 = vsub.f32 0.0, %v138_v52 }
  0x39   :  { %v71_v46 = vadd.f32 1.0, %v69_v42  ;;  %207 = vrcp.f32 %v113_v43  ;;  %v97_v51 = vsub.f32 0.0, %v95_v48  ;;  %v141_v61 = vmul.f32 1.442695, %v139_v53 }
  0x3a   :  { %v72_v47 = vadd.f32 1.0, %v70_v44  ;;  %209 = vrcp.f32 %v114_v45  ;;  %v98_v55 = vsub.f32 0.0, %v96_v50  ;;  %v143_v4 = vmul.f32 1.442695, %v140_v58 }
  0x3b   :  { %211 = vrcp.f32 %v71_v46  ;;  %v99_v57 = vmul.f32 1.442695, %v97_v51 }
  0x3c   :  { %213 = vrcp.f32 %v72_v47  ;;  %v101_v1 = vmul.f32 1.442695, %v98_v55 }
  0x3d   :  { %215 = vpow2.f32 %v99_v57 }
  0x3e   :  { %217 = vpow2.f32 %v141_v61 }
  0x3f   :  { %219 = vpow2.f32 %v101_v1 }
  0x40   :  { %221 = vpow2.f32 %v143_v4 }
  0x46   :  { %v208_v54 = vpop.eup %207 }
  0x47   :  { %v210_v56 = vpop.eup %209  ;;  %v119_v59 = vmul.f32 1.0614054, %v208_v54 }
  0x48   :  { %v212_v60 = vpop.eup %211  ;;  %v120_v62 = vmul.f32 1.0614054, %v210_v56 }
  0x49   :  { %v77_v63 = vmul.f32 1.0614054, %v212_v60  ;;  %v121_v0 = vadd.f32 -1.4531521, %v119_v59  ;;  %v214_v3 = vpop.eup %213 }
  0x4a   :  { %v122_v2 = vadd.f32 -1.4531521, %v120_v62  ;;  %v78_v7 = vmul.f32 1.0614054, %v214_v3  ;;  %v216_v30 = vpop.eup %215 }
  0x4b   :  { %v79_v5 = vadd.f32 -1.4531521, %v77_v63  ;;  %v123_v6 = vmul.f32 %v208_v54, %v121_v0  ;;  %v218_v33 = vpop.eup %217 }
  0x4c   :  { %v124_v8 = vmul.f32 %v210_v56, %v122_v2  ;;  %v80_v11 = vadd.f32 -1.4531521, %v78_v7  ;;  %v220_v38 = vpop.eup %219 }
  0x4d   :  { %v81_v9 = vmul.f32 %v212_v60, %v79_v5  ;;  %v125_v10 = vadd.f32 1.4214138, %v123_v6  ;;  %v222_v41 = vpop.eup %221 }
  0x4e   :  { %v126_v12 = vadd.f32 1.4214138, %v124_v8  ;;  %v82_v15 = vmul.f32 %v214_v3, %v80_v11 }
  0x4f   :  { %v83_v13 = vadd.f32 1.4214138, %v81_v9  ;;  %v127_v14 = vmul.f32 %v208_v54, %v125_v10 }
  0x50   :  { %v128_v16 = vmul.f32 %v210_v56, %v126_v12  ;;  %v84_v19 = vadd.f32 1.4214138, %v82_v15 }
  0x51   :  { %v85_v17 = vmul.f32 %v212_v60, %v83_v13  ;;  %v129_v18 = vadd.f32 -0.28449672, %v127_v14 }
  0x52   :  { %v130_v20 = vadd.f32 -0.28449672, %v128_v16  ;;  %v86_v23 = vmul.f32 %v214_v3, %v84_v19 }
  0x53   :  { %v87_v21 = vadd.f32 -0.28449672, %v85_v17  ;;  %v131_v22 = vmul.f32 %v208_v54, %v129_v18 }
  0x54   :  { %v132_v24 = vmul.f32 %v210_v56, %v130_v20  ;;  %v88_v27 = vadd.f32 -0.28449672, %v86_v23 }
  0x55   :  { %v89_v25 = vmul.f32 %v212_v60, %v87_v21  ;;  %v133_v26 = vadd.f32 0.2548296, %v131_v22 }
  0x56   :  { %v134_v29 = vadd.f32 0.2548296, %v132_v24  ;;  %v90_v32 = vmul.f32 %v214_v3, %v88_v27 }
  0x57   :  { %v91_v28 = vadd.f32 0.2548296, %v89_v25  ;;  %v135_v31 = vmul.f32 %v208_v54, %v133_v26 }
  0x58   :  { %v92_v37 = vadd.f32 0.2548296, %v90_v32  ;;  %v136_v40 = vmul.f32 %v210_v56, %v134_v29 }
  0x59   :  { %v93_v35 = vmul.f32 %v212_v60, %v91_v28  ;;  %v145_v42 = vmul.f32 %v218_v33, %v135_v31 }
  0x5a   :  { %v94_v43 = vmul.f32 %v214_v3, %v92_v37  ;;  %v146_v47 = vmul.f32 %v222_v41, %v136_v40 }
  0x5b   :  { %v103_v39 = vmul.f32 %v216_v30, %v93_v35 }
  0x5c   :  { %v104_v45 = vmul.f32 %v220_v38, %v94_v43 }
  0x5d   :  { %v107_v44 = vsub.f32 2.0, %v103_v39 }
  0x5e   :  { %v108_v49 = vsub.f32 2.0, %v104_v45 }
  0x5f   :  { %v109_v46 = vsel %vm105_vm2, %v107_v44, %v103_v39 }
  0x60   :  { %v147_v48 = vsub.f32 %v109_v46, %v145_v42  ;;  %v110_v51 = vsel %vm106_vm3, %v108_v49, %v104_v45 }
  0x61   :  { %v148_v52 = vsub.f32 %v110_v51, %v146_v47 }
  0x62   :  { %v149_v50 = vmul.f32 0.5, %v147_v48 }
  0x63   :  { %v150_v53 = vmul.f32 0.5, %v148_v52 }
  0x64   :  { %151 = vst [vmem:[#allocation8] sm:$0xff] %v149_v50 }
  0x65   :  { %152 = vst [vmem:[#allocation8 + $0x8] sm:$0xff] %v150_v53 }
  0x66   :  { %294 = shalt.err (!%p291_p5)
}
  0x67   :  { %172 = dma.vmem_to_hbm [thread:$0]  %s170_s25, 256, %s358_s3, [#allocation9]  }
  0x68   :  { %307 = dma.done.wait [#allocation4], 256  }
  0x69   :  { %308 = vsyncadd [#allocation4], 4294967040 }
  0x6a   :  { %309 = dma.done.wait [#allocation9], 256  }
  0x6b   :  { %310 = vsyncadd [#allocation9], 4294967040 }
  0x6c   :  { %179 = vsyncpa [#allocation3], 1 }
  0x6d   :  { %180 = vsyncpa [#allocation6], 1 }
  0x6e   :  { %181 = vsyncpa [#allocation4], 1 }
  0x6f   :  { %182 = vsyncpa [#allocation9], 1 }

</bundles_post_ra>
